<compile_context>
chip_gen: v7x
topology: tpu7x:2x2x1
jax: 0.10.0
libtpu: 0.0.40
codegen_flags: <defaults>
</compile_context>

<pallas_src>
import functools
import math

import jax
import jax.numpy as jnp
from jax.experimental import pallas as pl
from jax.experimental.pallas import tpu as pltpu

LN_EPS = 1e-5  # torch.nn.LayerNorm default


def _layer_norm(v):
    mu = jnp.mean(v, axis=-1, keepdims=True)
    var = jnp.mean((v - mu) ** 2, axis=-1, keepdims=True)
    return (v - mu) * jax.lax.rsqrt(var + LN_EPS)


def transformer_block_kernel(num_heads,
                             x_ref,       # (1, L, E)  f32
                             wqkv_ref,    # (3H, E, Dh) bf16  (q rows pre-scaled)
                             bqkv_ref,    # (3H, 1, Dh) f32   (q rows pre-scaled)
                             wo_ref,      # (H, Dh, E)  bf16
                             bo_ref,      # (1, E)      f32
                             w1_ref,      # (E, Hf)     bf16
                             w2_ref,      # (Hf, Hf)    bf16
                             w3_ref,      # (Hf, Hf)    bf16
                             out_ref):    # (1, L, E)
    f32 = jnp.float32
    bf16 = jnp.bfloat16
    H = num_heads

    x = x_ref[0].astype(f32)                 # (L, E) — first-axis load, no reshape
    L, E = x.shape

    # ---- sublayer 1: LayerNorm -> self-attention -> residual ----
    x1 = _layer_norm(x)                       # f32 VPU math

    # Fused QKV projection for all heads in one head-batched einsum
    # (MXU, bf16 in / f32 acc).  g indexes [q heads | k heads | v heads].
    x1b = jnp.broadcast_to(x1.astype(bf16)[None], (3 * H, L, E))
    qkv = jnp.einsum('gle,ged->gld', x1b, wqkv_ref[...],
                     preferred_element_type=f32) + bqkv_ref[...]
    qh = qkv[:H]                               # (H, L, Dh) — already 1/sqrt(Dh)-scaled
    kh = qkv[H:2 * H]
    vh = qkv[2 * H:]

    # Batched attention over heads (no Python head loop).
    s = jnp.einsum('hld,hmd->hlm', qh.astype(bf16), kh.astype(bf16),
                   preferred_element_type=f32)
    s = s - jnp.max(s, axis=-1, keepdims=True)
    p = jnp.exp(s)
    p = p * pl.reciprocal(jnp.sum(p, axis=-1, keepdims=True), approx=True)

    ctx = jnp.einsum('hlm,hmd->hld', p.astype(bf16), vh.astype(bf16),
                     preferred_element_type=f32)
    attn = jnp.einsum('hld,hde->hle', ctx.astype(bf16), wo_ref[...],
                      preferred_element_type=f32).sum(axis=0) + bo_ref[...]

    x2 = x + attn

    # ---- sublayer 2: LayerNorm -> SwiGLU -> dropout(p=0, identity) -> residual ----
    y = _layer_norm(x2)
    h1 = jnp.dot(y.astype(bf16), w1_ref[...], preferred_element_type=f32)
    h1 = h1 * jax.nn.sigmoid(h1)               # SiLU, f32 (EUP)
    gate = jnp.dot(h1.astype(bf16), w2_ref[...], preferred_element_type=f32)
    ff = jnp.dot((h1 * gate).astype(bf16), w3_ref[...],
                 preferred_element_type=f32)

    out_ref[0] = (x2 + ff).astype(out_ref.dtype)   # first-axis store, no reshape


@functools.partial(jax.jit, static_argnames=("num_heads",))
def transformer_block(x_lne, params, num_heads):
    """x_lne: (L, N, E) seq-first, like torch's MultiheadAttention default."""
    wq, wk, wv, bq, bk, bv, wo, bo, w1, w2, w3 = params
    E = wq.shape[0]
    Hf = w1.shape[0]
    H = num_heads
    Dh = E // H
    scale = 1.0 / math.sqrt(Dh)
    bf16 = jnp.bfloat16
    f32 = jnp.float32

    x_nle = jnp.transpose(x_lne, (1, 0, 2))   # (N, L, E)
    N, L, _ = x_nle.shape

    # Trace-time weight prep: head-stacked layouts, scale folded into q,
    # bf16 MXU operands (biases stay f32, added to f32 accumulators).
    def to_heads(w):                           # (E, E) -> (H, E_in, Dh)
        return jnp.transpose(w.reshape(H, Dh, E), (0, 2, 1))

    wqkv_heads = jnp.concatenate(
        [to_heads(wq * scale), to_heads(wk), to_heads(wv)], axis=0).astype(bf16)
    bqkv_heads = jnp.concatenate(
        [(bq * scale).reshape(H, 1, Dh),
         bk.reshape(H, 1, Dh),
         bv.reshape(H, 1, Dh)], axis=0).astype(f32)
    wo_heads = wo.T.reshape(H, Dh, E).astype(bf16)
    bo2 = bo.reshape(1, E).astype(f32)
    w1t = w1.T.astype(bf16)
    w2t = w2.T.astype(bf16)
    w3t = w3.T.astype(bf16)

    flops = int(2 * N * L * E * 3 * E                  # QKV projection
                + 2 * 2 * N * H * L * L * Dh           # scores + ctx
                + 2 * N * L * E * E                    # out projection
                + 2 * N * L * (E * Hf + 2 * Hf * Hf))  # SwiGLU
    transcendentals = int(N * H * L * L                # softmax exp
                          + N * L * Hf                 # sigmoid
                          + N * H * L + 4 * N * L)     # reciprocal + rsqrt
    bytes_accessed = int(2 * N * L * E * 4
                         + (wqkv_heads.size + wo_heads.size
                            + w1t.size + w2t.size + w3t.size) * 2
                         + (bqkv_heads.size + bo2.size) * 4)

    kernel = functools.partial(transformer_block_kernel, num_heads)
    out_nle = pl.pallas_call(
        kernel,
        grid=(N,),
        in_specs=[
            pl.BlockSpec((1, L, E), lambda n: (n, 0, 0)),
            pl.BlockSpec((3 * H, E, Dh), lambda n: (0, 0, 0)),
            pl.BlockSpec((3 * H, 1, Dh), lambda n: (0, 0, 0)),
            pl.BlockSpec((H, Dh, E), lambda n: (0, 0, 0)),
            pl.BlockSpec((1, E), lambda n: (0, 0)),
            pl.BlockSpec((E, Hf), lambda n: (0, 0)),
            pl.BlockSpec((Hf, Hf), lambda n: (0, 0)),
            pl.BlockSpec((Hf, Hf), lambda n: (0, 0)),
        ],
        out_specs=pl.BlockSpec((1, L, E), lambda n: (n, 0, 0)),
        out_shape=jax.ShapeDtypeStruct((N, L, E), x_nle.dtype),
        compiler_params=pltpu.CompilerParams(
            dimension_semantics=("parallel",)),
        cost_estimate=pl.CostEstimate(
            flops=flops, transcendentals=transcendentals,
            bytes_accessed=bytes_accessed),
    )(x_nle, wqkv_heads, bqkv_heads, wo_heads, bo2, w1t, w2t, w3t)
    return jnp.transpose(out_nle, (1, 0, 2))


def init_params(key, d_model, hidden_dim):
    E, Hf = d_model, hidden_dim
    ks = jax.random.split(key, 11)
    s = 0.05
    wq = jax.random.normal(ks[0], (E, E), jnp.float32) * s
    wk = jax.random.normal(ks[1], (E, E), jnp.float32) * s
    wv = jax.random.normal(ks[2], (E, E), jnp.float32) * s
    bq = jax.random.normal(ks[3], (1, E), jnp.float32) * s
    bk = jax.random.normal(ks[4], (1, E), jnp.float32) * s
    bv = jax.random.normal(ks[5], (1, E), jnp.float32) * s
    wo = jax.random.normal(ks[6], (E, E), jnp.float32) * s
    bo = jax.random.normal(ks[7], (1, E), jnp.float32) * s
    w1 = jax.random.normal(ks[8], (Hf, E), jnp.float32) * s    # SwiGLU l1
    w2 = jax.random.normal(ks[9], (Hf, Hf), jnp.float32) * s   # SwiGLU l2
    w3 = jax.random.normal(ks[10], (Hf, Hf), jnp.float32) * s  # SwiGLU l3
    return (wq, wk, wv, bq, bk, bv, wo, bo, w1, w2, w3)


def reference(x_lne, params, num_heads):
    """Pure-JAX f32 reference reproducing the PyTorch forward (dropout p=0)."""
    wq, wk, wv, bq, bk, bv, wo, bo, w1, w2, w3 = params
    x = jnp.transpose(x_lne, (1, 0, 2))        # (N, L, E)
    N, L, E = x.shape
    Dh = E // num_heads

    def ln(v):
        mu = v.mean(-1, keepdims=True)
        var = ((v - mu) ** 2).mean(-1, keepdims=True)
        return (v - mu) / jnp.sqrt(var + LN_EPS)

    x1 = ln(x)
    q = x1 @ wq.T + bq.reshape(E)
    k = x1 @ wk.T + bk.reshape(E)
    v_ = x1 @ wv.T + bv.reshape(E)
    qh = q.reshape(N, L, num_heads, Dh).transpose(0, 2, 1, 3)
    kh = k.reshape(N, L, num_heads, Dh).transpose(0, 2, 1, 3)
    vh = v_.reshape(N, L, num_heads, Dh).transpose(0, 2, 1, 3)
    s = jnp.einsum('nhqd,nhkd->nhqk', qh, kh) / math.sqrt(Dh)
    p = jax.nn.softmax(s, axis=-1)
    ctx = jnp.einsum('nhqk,nhkd->nhqd', p, vh)
    ctx = ctx.transpose(0, 2, 1, 3).reshape(N, L, E)
    x = x + (ctx @ wo.T + bo.reshape(E))
    y = ln(x)
    h1 = y @ w1.T
    h1 = h1 * jax.nn.sigmoid(h1)
    gate = h1 @ w2.T
    ff = (h1 * gate) @ w3.T
    return jnp.transpose(x + ff, (1, 0, 2))


if __name__ == "__main__":
    d_model = 32
    hidden_dim = 32     # must equal d_model for the module's residual to be valid
    num_heads = 4
    seq_len = 8
    batch = 2

    key = jax.random.PRNGKey(0)
    kx, kp = jax.random.split(key)
    x = jax.random.normal(kx, (seq_len, batch, d_model), jnp.float32)
    params = init_params(kp, d_model, hidden_dim)

    out = transformer_block(x, params, num_heads)
    out = jax.block_until_ready(out)

    ref = reference(x, params, num_heads)
    # bf16 MXU operands + approx reciprocal => relax tolerance vs f32 reference.
    if not jnp.allclose(out, ref, atol=3e-2, rtol=3e-2):
        err = float(jnp.max(jnp.abs(out - ref)))
        raise AssertionError(f"Pallas kernel does not match reference (max err {err})")
    print("KERNEL_OK")
</pallas_src>

<mosaic_0001>
module attributes {stable_mosaic.version = 11 : i64} {
  func.func @transformer_block_kernel(%arg0: i32, %arg1: memref<1x8x32xf32, #tpu.memory_space<vmem>>, %arg2: memref<12x32x8xbf16, #tpu.memory_space<vmem>>, %arg3: memref<12x1x8xf32, #tpu.memory_space<vmem>>, %arg4: memref<4x8x32xbf16, #tpu.memory_space<vmem>>, %arg5: memref<1x32xf32, #tpu.memory_space<vmem>>, %arg6: memref<32x32xbf16, #tpu.memory_space<vmem>>, %arg7: memref<32x32xbf16, #tpu.memory_space<vmem>>, %arg8: memref<32x32xbf16, #tpu.memory_space<vmem>>, %arg9: memref<1x8x32xf32, #tpu.memory_space<vmem>>) attributes {dimension_semantics = [#tpu.dimension_semantics<parallel>], iteration_bounds = array<i64: 2>, scalar_prefetch = 0 : i64, scratch_operands = 0 : i64, tpu.core_type = #tpu.core_type<tc>, window_params = [{transform_indices = @transform_0, window_bounds = array<i64: 1, 8, 32>}, {pipeline_mode = #tpu.pipeline_mode<synchronous>, transform_indices = @transform_1, window_bounds = array<i64: 12, 32, 8>}, {pipeline_mode = #tpu.pipeline_mode<synchronous>, transform_indices = @transform_2, window_bounds = array<i64: 12, 1, 8>}, {pipeline_mode = #tpu.pipeline_mode<synchronous>, transform_indices = @transform_3, window_bounds = array<i64: 4, 8, 32>}, {pipeline_mode = #tpu.pipeline_mode<synchronous>, transform_indices = @transform_4, window_bounds = array<i64: 1, 32>}, {pipeline_mode = #tpu.pipeline_mode<synchronous>, transform_indices = @transform_5, window_bounds = array<i64: 32, 32>}, {pipeline_mode = #tpu.pipeline_mode<synchronous>, transform_indices = @transform_6, window_bounds = array<i64: 32, 32>}, {pipeline_mode = #tpu.pipeline_mode<synchronous>, transform_indices = @transform_7, window_bounds = array<i64: 32, 32>}, {transform_indices = @transform_8, window_bounds = array<i64: 1, 8, 32>}]} {
    %c0 = arith.constant 0 : index
    %c0_0 = arith.constant 0 : index
    %c0_1 = arith.constant 0 : index
    %0 = vector.load %arg1[%c0, %c0_0, %c0_1] : memref<1x8x32xf32, #tpu.memory_space<vmem>>, vector<1x8x32xf32>
    %1 = vector.shape_cast %0 : vector<1x8x32xf32> to vector<8x32xf32>
    %cst = arith.constant dense<0.000000e+00> : vector<8xf32>
    %2 = vector.multi_reduction <add>, %1, %cst [1] : vector<8x32xf32> to vector<8xf32>
    %3 = vector.shape_cast %2 : vector<8xf32> to vector<8x1xf32>
    %cst_2 = arith.constant 3.200000e+01 : f32
    %4 = vector.broadcast %cst_2 : f32 to vector<8x1xf32>
    %5 = arith.divf %3, %4 : vector<8x1xf32>
    %6 = vector.broadcast %5 : vector<8x1xf32> to vector<8x32xf32>
    %7 = arith.subf %1, %6 : vector<8x32xf32>
    %8 = arith.mulf %7, %7 : vector<8x32xf32>
    %cst_3 = arith.constant dense<0.000000e+00> : vector<8xf32>
    %9 = vector.multi_reduction <add>, %8, %cst_3 [1] : vector<8x32xf32> to vector<8xf32>
    %10 = vector.shape_cast %9 : vector<8xf32> to vector<8x1xf32>
    %cst_4 = arith.constant 3.200000e+01 : f32
    %11 = vector.broadcast %cst_4 : f32 to vector<8x1xf32>
    %12 = arith.divf %10, %11 : vector<8x1xf32>
    %13 = vector.broadcast %5 : vector<8x1xf32> to vector<8x32xf32>
    %14 = arith.subf %1, %13 : vector<8x32xf32>
    %cst_5 = arith.constant 9.99999974E-6 : f32
    %15 = vector.broadcast %cst_5 : f32 to vector<8x1xf32>
    %16 = arith.addf %12, %15 : vector<8x1xf32>
    %17 = math.rsqrt %16 : vector<8x1xf32>
    %18 = vector.broadcast %17 : vector<8x1xf32> to vector<8x32xf32>
    %19 = arith.mulf %14, %18 : vector<8x32xf32>
    %20 = arith.truncf %19 : vector<8x32xf32> to vector<8x32xbf16>
    %21 = vector.shape_cast %20 : vector<8x32xbf16> to vector<1x8x32xbf16>
    %22 = vector.shape_cast %21 : vector<1x8x32xbf16> to vector<1x8x32xbf16>
    %23 = vector.broadcast %22 : vector<1x8x32xbf16> to vector<12x8x32xbf16>
    %c0_6 = arith.constant 0 : index
    %c0_7 = arith.constant 0 : index
    %c0_8 = arith.constant 0 : index
    %24 = vector.load %arg2[%c0_6, %c0_7, %c0_8] : memref<12x32x8xbf16, #tpu.memory_space<vmem>>, vector<12x32x8xbf16>
    "tpu.trace_start"() <{level = 10 : i32, message = "gle,ged->gld"}> : () -> ()
    %cst_9 = arith.constant dense<0.000000e+00> : vector<12x8x8xf32>
    %25 = tpu.matmul %23, %24, %cst_9 {dimension_numbers = #tpu.dot_dimension_numbers<[2], [1], [1], [2], [0, 0, 0, 1, 1, 2], [0], [0]>} : vector<12x8x32xbf16>, vector<12x32x8xbf16>, vector<12x8x8xf32> -> vector<12x8x8xf32>
    "tpu.trace_stop"() : () -> ()
    %c0_10 = arith.constant 0 : index
    %c0_11 = arith.constant 0 : index
    %c0_12 = arith.constant 0 : index
    %26 = vector.load %arg3[%c0_10, %c0_11, %c0_12] : memref<12x1x8xf32, #tpu.memory_space<vmem>>, vector<12x1x8xf32>
    %27 = vector.broadcast %26 : vector<12x1x8xf32> to vector<12x8x8xf32>
    %28 = arith.addf %25, %27 : vector<12x8x8xf32>
    %29 = vector.extract_strided_slice %28 {offsets = [0, 0, 0], sizes = [4, 8, 8], strides = [1, 1, 1]} : vector<12x8x8xf32> to vector<4x8x8xf32>
    %30 = vector.extract_strided_slice %28 {offsets = [4, 0, 0], sizes = [4, 8, 8], strides = [1, 1, 1]} : vector<12x8x8xf32> to vector<4x8x8xf32>
    %31 = vector.extract_strided_slice %28 {offsets = [8, 0, 0], sizes = [4, 8, 8], strides = [1, 1, 1]} : vector<12x8x8xf32> to vector<4x8x8xf32>
    %32 = arith.truncf %29 : vector<4x8x8xf32> to vector<4x8x8xbf16>
    %33 = arith.truncf %30 : vector<4x8x8xf32> to vector<4x8x8xbf16>
    "tpu.trace_start"() <{level = 10 : i32, message = "hld,hmd->hlm"}> : () -> ()
    %cst_13 = arith.constant dense<0.000000e+00> : vector<4x8x8xf32>
    %34 = tpu.matmul %32, %33, %cst_13 {dimension_numbers = #tpu.dot_dimension_numbers<[2], [2], [1], [1], [0, 0, 0, 1, 1, 1], [0], [0]>} : vector<4x8x8xbf16>, vector<4x8x8xbf16>, vector<4x8x8xf32> -> vector<4x8x8xf32>
    "tpu.trace_stop"() : () -> ()
    %cst_14 = arith.constant dense<0xFF800000> : vector<4x8xf32>
    %35 = vector.multi_reduction <maximumf>, %34, %cst_14 [2] : vector<4x8x8xf32> to vector<4x8xf32>
    %36 = vector.shape_cast %35 : vector<4x8xf32> to vector<4x8x1xf32>
    %37 = vector.broadcast %36 : vector<4x8x1xf32> to vector<4x8x8xf32>
    %38 = arith.subf %34, %37 : vector<4x8x8xf32>
    %39 = math.exp %38 : vector<4x8x8xf32>
    %cst_15 = arith.constant dense<0.000000e+00> : vector<4x8xf32>
    %40 = vector.multi_reduction <add>, %39, %cst_15 [2] : vector<4x8x8xf32> to vector<4x8xf32>
    %41 = vector.shape_cast %40 : vector<4x8xf32> to vector<4x8x1xf32>
    %42 = tpu.reciprocal %41 {approx = true} : vector<4x8x1xf32> -> vector<4x8x1xf32>
    %43 = vector.broadcast %42 : vector<4x8x1xf32> to vector<4x8x8xf32>
    %44 = arith.mulf %39, %43 : vector<4x8x8xf32>
    %45 = arith.truncf %44 : vector<4x8x8xf32> to vector<4x8x8xbf16>
    %46 = arith.truncf %31 : vector<4x8x8xf32> to vector<4x8x8xbf16>
    "tpu.trace_start"() <{level = 10 : i32, message = "hlm,hmd->hld"}> : () -> ()
    %cst_16 = arith.constant dense<0.000000e+00> : vector<4x8x8xf32>
    %47 = tpu.matmul %45, %46, %cst_16 {dimension_numbers = #tpu.dot_dimension_numbers<[2], [1], [1], [2], [0, 0, 0, 1, 1, 2], [0], [0]>} : vector<4x8x8xbf16>, vector<4x8x8xbf16>, vector<4x8x8xf32> -> vector<4x8x8xf32>
    "tpu.trace_stop"() : () -> ()
    %48 = arith.truncf %47 : vector<4x8x8xf32> to vector<4x8x8xbf16>
    %c0_17 = arith.constant 0 : index
    %c0_18 = arith.constant 0 : index
    %c0_19 = arith.constant 0 : index
    %49 = vector.load %arg4[%c0_17, %c0_18, %c0_19] : memref<4x8x32xbf16, #tpu.memory_space<vmem>>, vector<4x8x32xbf16>
    "tpu.trace_start"() <{level = 10 : i32, message = "hld,hde->hle"}> : () -> ()
    %cst_20 = arith.constant dense<0.000000e+00> : vector<4x8x32xf32>
    %50 = tpu.matmul %48, %49, %cst_20 {dimension_numbers = #tpu.dot_dimension_numbers<[2], [1], [1], [2], [0, 0, 0, 1, 1, 2], [0], [0]>} : vector<4x8x8xbf16>, vector<4x8x32xbf16>, vector<4x8x32xf32> -> vector<4x8x32xf32>
    "tpu.trace_stop"() : () -> ()
    %cst_21 = arith.constant dense<0.000000e+00> : vector<8x32xf32>
    %51 = vector.multi_reduction <add>, %50, %cst_21 [0] : vector<4x8x32xf32> to vector<8x32xf32>
    %c0_22 = arith.constant 0 : index
    %c0_23 = arith.constant 0 : index
    %52 = vector.load %arg5[%c0_22, %c0_23] : memref<1x32xf32, #tpu.memory_space<vmem>>, vector<1x32xf32>
    %53 = vector.broadcast %52 : vector<1x32xf32> to vector<8x32xf32>
    %54 = arith.addf %51, %53 : vector<8x32xf32>
    %55 = arith.addf %1, %54 : vector<8x32xf32>
    %cst_24 = arith.constant dense<0.000000e+00> : vector<8xf32>
    %56 = vector.multi_reduction <add>, %55, %cst_24 [1] : vector<8x32xf32> to vector<8xf32>
    %57 = vector.shape_cast %56 : vector<8xf32> to vector<8x1xf32>
    %cst_25 = arith.constant 3.200000e+01 : f32
    %58 = vector.broadcast %cst_25 : f32 to vector<8x1xf32>
    %59 = arith.divf %57, %58 : vector<8x1xf32>
    %60 = vector.broadcast %59 : vector<8x1xf32> to vector<8x32xf32>
    %61 = arith.subf %55, %60 : vector<8x32xf32>
    %62 = arith.mulf %61, %61 : vector<8x32xf32>
    %cst_26 = arith.constant dense<0.000000e+00> : vector<8xf32>
    %63 = vector.multi_reduction <add>, %62, %cst_26 [1] : vector<8x32xf32> to vector<8xf32>
    %64 = vector.shape_cast %63 : vector<8xf32> to vector<8x1xf32>
    %cst_27 = arith.constant 3.200000e+01 : f32
    %65 = vector.broadcast %cst_27 : f32 to vector<8x1xf32>
    %66 = arith.divf %64, %65 : vector<8x1xf32>
    %67 = vector.broadcast %59 : vector<8x1xf32> to vector<8x32xf32>
    %68 = arith.subf %55, %67 : vector<8x32xf32>
    %cst_28 = arith.constant 9.99999974E-6 : f32
    %69 = vector.broadcast %cst_28 : f32 to vector<8x1xf32>
    %70 = arith.addf %66, %69 : vector<8x1xf32>
    %71 = math.rsqrt %70 : vector<8x1xf32>
    %72 = vector.broadcast %71 : vector<8x1xf32> to vector<8x32xf32>
    %73 = arith.mulf %68, %72 : vector<8x32xf32>
    %74 = arith.truncf %73 : vector<8x32xf32> to vector<8x32xbf16>
    %c0_29 = arith.constant 0 : index
    %c0_30 = arith.constant 0 : index
    %75 = vector.load %arg6[%c0_29, %c0_30] : memref<32x32xbf16, #tpu.memory_space<vmem>>, vector<32x32xbf16>
    %cst_31 = arith.constant dense<0.000000e+00> : vector<8x32xf32>
    %76 = tpu.matmul %74, %75, %cst_31 {dimension_numbers = #tpu.dot_dimension_numbers<[1], [0], [0], [1], [0, 0, 1, 1], [], []>} : vector<8x32xbf16>, vector<32x32xbf16>, vector<8x32xf32> -> vector<8x32xf32>
    %77 = arith.negf %76 : vector<8x32xf32>
    %78 = math.exp %77 : vector<8x32xf32>
    %cst_32 = arith.constant 1.000000e+00 : f32
    %79 = vector.broadcast %cst_32 : f32 to vector<8x32xf32>
    %80 = arith.addf %79, %78 : vector<8x32xf32>
    %81 = arith.divf %79, %80 : vector<8x32xf32>
    %82 = arith.mulf %76, %81 : vector<8x32xf32>
    %83 = arith.truncf %82 : vector<8x32xf32> to vector<8x32xbf16>
    %c0_33 = arith.constant 0 : index
    %c0_34 = arith.constant 0 : index
    %84 = vector.load %arg7[%c0_33, %c0_34] : memref<32x32xbf16, #tpu.memory_space<vmem>>, vector<32x32xbf16>
    %cst_35 = arith.constant dense<0.000000e+00> : vector<8x32xf32>
    %85 = tpu.matmul %83, %84, %cst_35 {dimension_numbers = #tpu.dot_dimension_numbers<[1], [0], [0], [1], [0, 0, 1, 1], [], []>} : vector<8x32xbf16>, vector<32x32xbf16>, vector<8x32xf32> -> vector<8x32xf32>
    %86 = arith.mulf %82, %85 : vector<8x32xf32>
    %87 = arith.truncf %86 : vector<8x32xf32> to vector<8x32xbf16>
    %c0_36 = arith.constant 0 : index
    %c0_37 = arith.constant 0 : index
    %88 = vector.load %arg8[%c0_36, %c0_37] : memref<32x32xbf16, #tpu.memory_space<vmem>>, vector<32x32xbf16>
    %cst_38 = arith.constant dense<0.000000e+00> : vector<8x32xf32>
    %89 = tpu.matmul %87, %88, %cst_38 {dimension_numbers = #tpu.dot_dimension_numbers<[1], [0], [0], [1], [0, 0, 1, 1], [], []>} : vector<8x32xbf16>, vector<32x32xbf16>, vector<8x32xf32> -> vector<8x32xf32>
    %90 = arith.addf %55, %89 : vector<8x32xf32>
    %c0_39 = arith.constant 0 : index
    %c0_40 = arith.constant 0 : index
    %c0_41 = arith.constant 0 : index
    %91 = vector.load %arg9[%c0_39, %c0_40, %c0_41] : memref<1x8x32xf32, #tpu.memory_space<vmem>>, vector<1x8x32xf32>
    %92 = vector.shape_cast %91 : vector<1x8x32xf32> to vector<8x32xf32>
    %93 = vector.shape_cast %90 : vector<8x32xf32> to vector<1x8x32xf32>
    tpu.vector_store %arg9[%c0_39, %c0_40, %c0_41], %93 {strides = array<i32>} : memref<1x8x32xf32, #tpu.memory_space<vmem>>, vector<1x8x32xf32>,
    return
  }
  func.func @transform_0(%arg0: i32) -> (i32, i32, i32) {
    %c0_i32 = arith.constant 0 : i32
    %c0_i32_0 = arith.constant 0 : i32
    %c0_i32_1 = arith.constant 0 : i32
    return %arg0, %c0_i32, %c0_i32_0 : i32, i32, i32
  }
  func.func @transform_1(%arg0: i32) -> (i32, i32, i32) {
    %c0_i32 = arith.constant 0 : i32
    %c0_i32_0 = arith.constant 0 : i32
    %c0_i32_1 = arith.constant 0 : i32
    %c0_i32_2 = arith.constant 0 : i32
    return %c0_i32, %c0_i32_0, %c0_i32_1 : i32, i32, i32
  }
  func.func @transform_2(%arg0: i32) -> (i32, i32, i32) {
    %c0_i32 = arith.constant 0 : i32
    %c0_i32_0 = arith.constant 0 : i32
    %c0_i32_1 = arith.constant 0 : i32
    %c0_i32_2 = arith.constant 0 : i32
    return %c0_i32, %c0_i32_0, %c0_i32_1 : i32, i32, i32
  }
  func.func @transform_3(%arg0: i32) -> (i32, i32, i32) {
    %c0_i32 = arith.constant 0 : i32
    %c0_i32_0 = arith.constant 0 : i32
    %c0_i32_1 = arith.constant 0 : i32
    %c0_i32_2 = arith.constant 0 : i32
    return %c0_i32, %c0_i32_0, %c0_i32_1 : i32, i32, i32
  }
  func.func @transform_4(%arg0: i32) -> (i32, i32) {
    %c0_i32 = arith.constant 0 : i32
    %c0_i32_0 = arith.constant 0 : i32
    %c0_i32_1 = arith.constant 0 : i32
    return %c0_i32, %c0_i32_0 : i32, i32
  }
  func.func @transform_5(%arg0: i32) -> (i32, i32) {
    %c0_i32 = arith.constant 0 : i32
    %c0_i32_0 = arith.constant 0 : i32
    %c0_i32_1 = arith.constant 0 : i32
    return %c0_i32, %c0_i32_0 : i32, i32
  }
  func.func @transform_6(%arg0: i32) -> (i32, i32) {
    %c0_i32 = arith.constant 0 : i32
    %c0_i32_0 = arith.constant 0 : i32
    %c0_i32_1 = arith.constant 0 : i32
    return %c0_i32, %c0_i32_0 : i32, i32
  }
  func.func @transform_7(%arg0: i32) -> (i32, i32) {
    %c0_i32 = arith.constant 0 : i32
    %c0_i32_0 = arith.constant 0 : i32
    %c0_i32_1 = arith.constant 0 : i32
    return %c0_i32, %c0_i32_0 : i32, i32
  }
  func.func @transform_8(%arg0: i32) -> (i32, i32, i32) {
    %c0_i32 = arith.constant 0 : i32
    %c0_i32_0 = arith.constant 0 : i32
    %c0_i32_1 = arith.constant 0 : i32
    return %arg0, %c0_i32, %c0_i32_0 : i32, i32, i32
  }
}

</mosaic_0001>

<bundles_post_ra>
// kernel: transformer_block.1
= control target key start
LH: loop header
LB: loop body
LE: loop exit
PB: predicated region body
PF: predicated region fallthrough
CT: control target
= control target key end

     0   :  { %s2432_s27 = smov 0   ;;  %s2774_s0 = inlined_call_operand.vmem [shape: f32[2,8,32], index: 0, kind: input, shape index: {}]   ;;  %s2775_s1 = inlined_call_operand.vmem [shape: bf16[12,32,8], index: 1, kind: input, shape index: {}]   ;;  %s2776_s2 = inlined_call_operand.vmem [shape: f32[12,1,8], index: 2, kind: input, shape index: {}]   ;;  %s2777_s3 = inlined_call_operand.vmem [shape: bf16[4,8,32], index: 3, kind: input, shape index: {}]   ;;  %s2778_s4 = inlined_call_operand.vmem [shape: f32[1,32], index: 4, kind: input, shape index: {}]   ;;  %s2779_s5 = inlined_call_operand.vmem [shape: bf16[32,32], index: 5, kind: input, shape index: {}]   ;;  %s2780_s6 = inlined_call_operand.vmem [shape: bf16[32,32], index: 6, kind: input, shape index: {}]   ;;  %s2781_s7 = inlined_call_operand.vmem [shape: bf16[32,32], index: 7, kind: input, shape index: {}]   ;;  %s2782_s8 = inlined_call_operand.vmem [shape: f32[2,8,32], index: 8, kind: output, shape index: {}]  }
   0x1 LB: > { %s1972_s28 = sadd.s32 4294967295, %s2383_s27   ;;  %p1976_p0 = scmp.ge.s32.totalorder %s2383_s27, 1  ;;  %s2383_s27 = sphi %s2432_s27, %s18_s27  }
   0x2   : > { %p261_p1 = scmp.lt.s32.totalorder %s2383_s27, 3 }
   0x4   : > { %p262_p2 = pnand %p1976_p0, %p261_p1 }
   0x5   : > { %p293_p3 = scmp.lt.s32.totalorder (!%p262_p2), %s1972_s28, 1  ;;  %vm303_vm0 = vcmask (!%p262_p2), 261120   ;;  %v2323_v7 = vld [vmem:[%s2775_s1] sm:$0xff] (!%p262_p2)   ;;  %v2324_v8 = vld [vmem:[%s2775_s1 + $0x10] sm:$0xff] (!%p262_p2)   ;;  %v2385_v9 = vmov (!%p262_p2), 0.0   ;;  %v2325_v10 = vld [vmem:[%s2775_s1 + $0x8] sm:$0xff] (!%p262_p2)  }
   0x6   : > { %265 = sbr.rel (%p262_p2) target bundleno = 2525 (0x9dd), region = 52  ;;  %2121 = vmatprep.subr.bf16.mxu0 (!%p262_p2), %v2385_v9  ;;  %2129 = vmatprep.subr.bf16.mxu1 (!%p262_p2), %v2385_v9  ;;  %v2326_v11 = vld [vmem:[%s2775_s1 + $0x18] sm:$0xff] (!%p262_p2)   ;;  %vm2386_vm1 = vmmov (!%p262_p2), 0   ;;  %v2327_v17 = vld [vmem:[%s2775_s1 + $0x20] sm:$0xff] (!%p262_p2)   ;;  %v2328_v18 = vld [vmem:[%s2775_s1 + $0x30] sm:$0xff] (!%p262_p2)   ;;  %vm1086_vm2 = vcmask (!%p262_p2), 64512  }
   0x7   : > { %2122 = vmatpush3.bf16.msra.mxu0 (!%p262_p2), %v2323_v7  ;;  %2130 = vmatpush3.bf16.msra.mxu1 (!%p262_p2), %v2324_v8  ;;  %v2329_v20 = vld [vmem:[%s2775_s1 + $0x28] sm:$0xff] (!%p262_p2)   ;;  %v2330_v21 = vld [vmem:[%s2775_s1 + $0x38] sm:$0xff] (!%p262_p2)   ;;  %v2331_v22 = vld [vmem:[%s2775_s1 + $0x40] sm:$0xff] (!%p262_p2)   ;;  %vm1326_vm3 = vcmask (!%p262_p2), 1043456  }
   0x8   : > { %2123 = vmatprep.subr.bf16.mxu0 (!%p262_p2), %v2385_v9  ;;  %2131 = vmatprep.subr.bf16.mxu1 (!%p262_p2), %v2385_v9  ;;  %v2332_v23 = vld [vmem:[%s2775_s1 + $0x50] sm:$0xff] (!%p262_p2)   ;;  %v2333_v24 = vld [vmem:[%s2775_s1 + $0x48] sm:$0xff] (!%p262_p2)   ;;  %v2334_v25 = vld [vmem:[%s2775_s1 + $0x58] sm:$0xff] (!%p262_p2)  }
   0x9   : > { %2125 = vmatprep.mubr.msk.bf16.mxu0 (!%p262_p2), %vm2386_vm1, %v2385_v9  ;;  %2133 = vmatprep.mubr.msk.bf16.mxu1 (!%p262_p2), %vm2386_vm1, %v2385_v9  ;;  %v2335_v26 = vld [vmem:[%s2775_s1 + $0x60] sm:$0xff] (!%p262_p2)   ;;  %v2336_v27 = vld [vmem:[%s2775_s1 + $0x70] sm:$0xff] (!%p262_p2)   ;;  %v2337_v28 = vld [vmem:[%s2775_s1 + $0x68] sm:$0xff] (!%p262_p2)  }
   0xa   : > { %v2338_v29 = vld [vmem:[%s2775_s1 + $0x78] sm:$0xff] (!%p262_p2)   ;;  %v2339_v30 = vld [vmem:[%s2775_s1 + $0x80] sm:$0xff] (!%p262_p2)   ;;  %v2340_v31 = vld [vmem:[%s2775_s1 + $0x90] sm:$0xff] (!%p262_p2)  }
   0xb   : > { %2124 = vmatpush3.bf16.msra.mxu0 (!%p262_p2), %v2325_v10  ;;  %2132 = vmatpush3.bf16.msra.mxu1 (!%p262_p2), %v2326_v11  ;;  %v2341_v32 = vld [vmem:[%s2775_s1 + $0x88] sm:$0xff] (!%p262_p2)   ;;  %v2342_v33 = vld [vmem:[%s2775_s1 + $0x98] sm:$0xff] (!%p262_p2)   ;;  %v2343_v34 = vld [vmem:[%s2775_s1 + $0xa0] sm:$0xff] (!%p262_p2)  }
   0xc   : > { %2137 = vmatprep.subr.bf16.mxu0 (!%p262_p2), %v2385_v9  ;;  %2145 = vmatprep.subr.bf16.mxu1 (!%p262_p2), %v2385_v9  ;;  %v2344_v35 = vld [vmem:[%s2775_s1 + $0xb0] sm:$0xff] (!%p262_p2)   ;;  %v2345_v36 = vld [vmem:[%s2775_s1 + $0xa8] sm:$0xff] (!%p262_p2)   ;;  %v2346_v37 = vld [vmem:[%s2775_s1 + $0xb8] sm:$0xff] (!%p262_p2)  }
   0xd   : > { %s2784_s28 = smov (!%p293_p3, %s1972_s28), 1  ;;  %v1983_v54 = vld [vmem:[%s2776_s2 + $0x4] ss:$0 sm:$0xff]  ;;  %v1984_v55 = vld [vmem:[%s2776_s2 + $0x5] ss:$0 sm:$0xff] }
   0xe   : > { %s1977_s29 = sshll.u32 %s2784_s28, 3  ;;  %v1985_v10 = vld [vmem:[%s2776_s2 + $0x6] ss:$0 sm:$0xff]  ;;  %v1986_v11 = vld [vmem:[%s2776_s2 + $0x7] ss:$0 sm:$0xff] }
   0xf   : > { %s296_s10 = scalar_lea.vmem %s2774_s0, %s1977_s29  ;;  %s300_s12 = scalar_lea.vmem %s2782_s8, %s1977_s29 }
  0x10   : > { %v2448_v0 = vld [vmem:[%s296_s10] sm:$0xff] }
  0x11   : > { %v304_v1 = vsel %vm303_vm0, %v2448_v0, 0.0 }
  0x12   : > { %305 = vadd.xlane.f32.xlu0 %v304_v1 }
  0x9f   : > { %v306_v2 = vpop.xlane.xlu0 %305 }
  0xa0   : > { %v308_v3 = vmul.f32 0.03125, %v306_v2 }
  0xa2   : > { %v309_v4 = vsub.f32 %v2448_v0, %v308_v3 }
  0xa4   : > { %v310_v5 = vmul.f32 %v309_v4, %v309_v4 }
  0xa6   : > { %v311_v6 = vsel %vm303_vm0, %v310_v5, 0.0  ;;  %v1979_v5 = vld [vmem:[%s2776_s2] ss:$0 sm:$0xff] }
  0xa7   : > { %312 = vadd.xlane.f32.xlu0 %v311_v6  ;;  %v1980_v6 = vld [vmem:[%s2776_s2 + $0x1] ss:$0 sm:$0xff] }
 0x134   : > { %v313_v12 = vpop.xlane.xlu0 %312 }
 0x135   : > { %v314_v13 = vmul.f32 0.03125, %v313_v12 }
 0x137   : > { %v315_v14 = vadd.f32 1e-05, %v314_v13 }
 0x139   : > { %2353 = vrsqrt.f32 %v315_v14 }
 0x143   : > { %v2354_v15 = vpop.eup %2353 }
 0x144   : > { %v317_v16 = vmul.f32 %v2354_v15, %v309_v4 }
 0x146   : > { %v2482_v19 = vpack.c.bf16 %v317_v16, %v317_v16 }
 0x148   : > { %2126 = vmatmul.mubr.msk.bf16.vlgmr.msra.gmra.mrb[0].mxu0 %vm303_vm0, %v2482_v19  ;;  %2134 = vmatmul.mubr.msk.bf16.vlgmr.msra.gmra.mrb[0].mxu1 %vm303_vm0, %v2482_v19 }
 0x149   : > { %2138 = vmatpush3.bf16.msra.mxu0 %v2327_v17  ;;  %2146 = vmatpush3.bf16.msra.mxu1 %v2328_v18 }
 0x14a   : > { %2139 = vmatprep.subr.bf16.mxu0 %v2385_v9  ;;  %2147 = vmatprep.subr.bf16.mxu1 %v2385_v9 }
 0x14b   : > { %2141 = vmatprep.mubr.msk.bf16.mxu0 %vm2386_vm1, %v2385_v9  ;;  %2149 = vmatprep.mubr.msk.bf16.mxu1 %vm2386_vm1, %v2385_v9 }
 0x14d   : > { %2140 = vmatpush3.bf16.msra.mxu0 %v2329_v20  ;;  %2148 = vmatpush3.bf16.msra.mxu1 %v2330_v21 }
 0x14e   : > { %2153 = vmatprep.subr.bf16.mxu0 %v2385_v9  ;;  %2161 = vmatprep.subr.bf16.mxu1 %v2385_v9 }
 0x150   : > { %2142 = vmatmul.mubr.msk.bf16.vlgmr.msra.gmra.mrb[4].mxu0 %vm303_vm0, %v2482_v19  ;;  %2150 = vmatmul.mubr.msk.bf16.vlgmr.msra.gmra.mrb[4].mxu1 %vm303_vm0, %v2482_v19 }
 0x151   : > { %2154 = vmatpush3.bf16.msra.mxu0 %v2331_v22  ;;  %2162 = vmatpush3.bf16.msra.mxu1 %v2332_v23 }
 0x152   : > { %2155 = vmatprep.subr.bf16.mxu0 %v2385_v9  ;;  %2163 = vmatprep.subr.bf16.mxu1 %v2385_v9 }
 0x153   : > { %2157 = vmatprep.mubr.msk.bf16.mxu0 %vm2386_vm1, %v2385_v9  ;;  %2165 = vmatprep.mubr.msk.bf16.mxu1 %vm2386_vm1, %v2385_v9 }
 0x155   : > { %2156 = vmatpush3.bf16.msra.mxu0 %v2333_v24  ;;  %2164 = vmatpush3.bf16.msra.mxu1 %v2334_v25 }
 0x156   : > { %2169 = vmatprep.subr.bf16.mxu0 %v2385_v9  ;;  %2177 = vmatprep.subr.bf16.mxu1 %v2385_v9 }
 0x158   : > { %2158 = vmatmul.mubr.msk.bf16.vlgmr.msra.gmra.mrb[8].mxu0 %vm303_vm0, %v2482_v19  ;;  %2166 = vmatmul.mubr.msk.bf16.vlgmr.msra.gmra.mrb[8].mxu1 %vm303_vm0, %v2482_v19 }
 0x159   : > { %2170 = vmatpush3.bf16.msra.mxu0 %v2335_v26  ;;  %2178 = vmatpush3.bf16.msra.mxu1 %v2336_v27 }
 0x15a   : > { %2171 = vmatprep.subr.bf16.mxu0 %v2385_v9  ;;  %2179 = vmatprep.subr.bf16.mxu1 %v2385_v9 }
 0x15b   : > { %2173 = vmatprep.mubr.msk.bf16.mxu0 %vm2386_vm1, %v2385_v9  ;;  %2181 = vmatprep.mubr.msk.bf16.mxu1 %vm2386_vm1, %v2385_v9 }
 0x15d   : > { %2172 = vmatpush3.bf16.msra.mxu0 %v2337_v28  ;;  %2180 = vmatpush3.bf16.msra.mxu1 %v2338_v29  ;;  %v1981_v28 = vld [vmem:[%s2776_s2 + $0x2] ss:$0 sm:$0xff]  ;;  %v1982_v29 = vld [vmem:[%s2776_s2 + $0x3] ss:$0 sm:$0xff] }
 0x15e   : > { %2185 = vmatprep.subr.bf16.mxu0 %v2385_v9  ;;  %2193 = vmatprep.subr.bf16.mxu1 %v2385_v9 }
 0x160   : > { %2174 = vmatmul.mubr.msk.bf16.vlgmr.msra.gmra.mrb[12].mxu0 %vm303_vm0, %v2482_v19  ;;  %2182 = vmatmul.mubr.msk.bf16.vlgmr.msra.gmra.mrb[12].mxu1 %vm303_vm0, %v2482_v19 }
 0x161   : > { %2186 = vmatpush3.bf16.msra.mxu0 %v2339_v30  ;;  %2194 = vmatpush3.bf16.msra.mxu1 %v2340_v31 }
 0x162   : > { %2187 = vmatprep.subr.bf16.mxu0 %v2385_v9  ;;  %2195 = vmatprep.subr.bf16.mxu1 %v2385_v9 }
 0x163   : > { %2189 = vmatprep.mubr.msk.bf16.mxu0 %vm2386_vm1, %v2385_v9  ;;  %2197 = vmatprep.mubr.msk.bf16.mxu1 %vm2386_vm1, %v2385_v9 }
 0x165   : > { %2188 = vmatpush3.bf16.msra.mxu0 %v2341_v32  ;;  %2196 = vmatpush3.bf16.msra.mxu1 %v2342_v33  ;;  %v1987_v32 = vld [vmem:[%s2776_s2 + $0x8] ss:$0 sm:$0xff]  ;;  %v1988_v33 = vld [vmem:[%s2776_s2 + $0x9] ss:$0 sm:$0xff] }
 0x166   : > { %2201 = vmatprep.subr.bf16.mxu0 %v2385_v9  ;;  %2209 = vmatprep.subr.bf16.mxu1 %v2385_v9 }
 0x168   : > { %2190 = vmatmul.mubr.msk.bf16.vlgmr.msra.gmra.mrb[16].mxu0 %vm303_vm0, %v2482_v19  ;;  %2198 = vmatmul.mubr.msk.bf16.vlgmr.msra.gmra.mrb[16].mxu1 %vm303_vm0, %v2482_v19 }
 0x169   : > { %2202 = vmatpush3.bf16.msra.mxu0 %v2343_v34  ;;  %2210 = vmatpush3.bf16.msra.mxu1 %v2344_v35 }
 0x16a   : > { %2203 = vmatprep.subr.bf16.mxu0 %v2385_v9  ;;  %2211 = vmatprep.subr.bf16.mxu1 %v2385_v9 }
 0x16b   : > { %2205 = vmatprep.mubr.msk.bf16.mxu0 %vm2386_vm1, %v2385_v9  ;;  %2213 = vmatprep.mubr.msk.bf16.mxu1 %vm2386_vm1, %v2385_v9 }
 0x16d   : > { %2204 = vmatpush3.bf16.msra.mxu0 %v2345_v36  ;;  %2212 = vmatpush3.bf16.msra.mxu1 %v2346_v37 }
 0x16e   : > { %2217 = vmatprep.subr.bf16.mxu0 %v2385_v9  ;;  %2223 = vmatprep.subr.bf16.mxu1 %v2385_v9 }
 0x170   : > { %2206 = vmatmul.mubr.msk.bf16.vlgmr.msra.gmra.mrb[20].mxu0 %vm303_vm0, %v2482_v19  ;;  %2214 = vmatmul.mubr.msk.bf16.vlgmr.msra.gmra.mrb[20].mxu1 %vm303_vm0, %v2482_v19 }
 0x171   : > { %2219 = vmatprep.mubr.msk.bf16.mxu0 %vm2386_vm1, %v2385_v9  ;;  %2225 = vmatprep.mubr.msk.bf16.mxu1 %vm2386_vm1, %v2385_v9 }
 0x21b   : > { %v500_v38 = vpop.f32.mrb[0].mxu0  ;;  %v552_v39 = vpop.f32.mrb[0].mxu1 }
 0x21c   : > { %v2127_v40 = vpop.f32.mrb[1].mxu0  ;;  %v2135_v41 = vpop.f32.mrb[1].mxu1  ;;  %v501_v12 = vadd.f32 %v1979_v5, %v500_v38  ;;  %v553_v13 = vadd.f32 %v1980_v6, %v552_v39 }
 0x21d   : > { %v503_v42 = vpop.f32.mrb[2].mxu0  ;;  %v555_v43 = vpop.f32.mrb[2].mxu1 }
 0x21e   : > { %v2128_v44 = vpop.f32.mrb[3].mxu0  ;;  %v2136_v45 = vpop.f32.mrb[3].mxu1  ;;  %v1078_v22 = vpack.c.bf16 %v501_v12, %v501_v12  ;;  %v1079_v23 = vpack.c.bf16 %v553_v13, %v553_v13 }
 0x223   : > { %v604_v46 = vpop.f32.mrb[4].mxu0  ;;  %v656_v47 = vpop.f32.mrb[4].mxu1 }
 0x224   : > { %v2143_v48 = vpop.f32.mrb[5].mxu0  ;;  %v2151_v49 = vpop.f32.mrb[5].mxu1  ;;  %v605_v34 = vadd.f32 %v1981_v28, %v604_v46  ;;  %v657_v35 = vadd.f32 %v1982_v29, %v656_v47 }
 0x225   : > { %v607_v50 = vpop.f32.mrb[6].mxu0  ;;  %v659_v51 = vpop.f32.mrb[6].mxu1 }
 0x226   : > { %v2144_v52 = vpop.f32.mrb[7].mxu0  ;;  %v2152_v53 = vpop.f32.mrb[7].mxu1  ;;  %v1080_v44 = vpack.c.bf16 %v605_v34, %v605_v34  ;;  %v1081_v45 = vpack.c.bf16 %v657_v35, %v657_v35 }
 0x22b   : > { %v708_v56 = vpop.f32.mrb[8].mxu0  ;;  %v760_v57 = vpop.f32.mrb[8].mxu1 }
 0x22c   : > { %v709_v58 = vadd.f32 %v1983_v54, %v708_v56  ;;  %v761_v59 = vadd.f32 %v1984_v55, %v760_v57  ;;  %v2159_v60 = vpop.f32.mrb[9].mxu0  ;;  %v2167_v61 = vpop.f32.mrb[9].mxu1 }
 0x22d   : > { %v711_v62 = vpop.f32.mrb[10].mxu0  ;;  %v763_v63 = vpop.f32.mrb[10].mxu1 }
 0x22e   : > { %v1082_v1 = vpack.c.bf16 %v709_v58, %v709_v58  ;;  %v1083_v2 = vpack.c.bf16 %v761_v59, %v761_v59  ;;  %v2160_v3 = vpop.f32.mrb[11].mxu0  ;;  %v2168_v4 = vpop.f32.mrb[11].mxu1 }
 0x230   : > { %v1091_v7 = vsel %vm1086_vm2, %v1082_v1, 0  ;;  %v1137_v8 = vsel %vm1086_vm2, %v1083_v2, 0 }
 0x231   : > { %2218 = vmatpush3.bf16.xpose.msra.mxu0 %v1091_v7  ;;  %2224 = vmatpush3.bf16.xpose.msra.mxu1 %v1137_v8 }
 0x232   : > { %2229 = vmatprep.subr.bf16.mxu0 %v2385_v9  ;;  %2235 = vmatprep.subr.bf16.mxu1 %v2385_v9 }
 0x233   : > { %v812_v14 = vpop.f32.mrb[12].mxu0  ;;  %v864_v15 = vpop.f32.mrb[12].mxu1 }
 0x234   : > { %v813_v16 = vadd.f32 %v1985_v10, %v812_v14  ;;  %v865_v17 = vadd.f32 %v1986_v11, %v864_v15  ;;  %v2175_v18 = vpop.f32.mrb[13].mxu0  ;;  %v2183_v19 = vpop.f32.mrb[13].mxu1 }
 0x235   : > { %v815_v20 = vpop.f32.mrb[14].mxu0  ;;  %v867_v21 = vpop.f32.mrb[14].mxu1 }
 0x236   : > { %v1084_v24 = vpack.c.bf16 %v813_v16, %v813_v16  ;;  %v1085_v25 = vpack.c.bf16 %v865_v17, %v865_v17  ;;  %v2176_v26 = vpop.f32.mrb[15].mxu0  ;;  %v2184_v27 = vpop.f32.mrb[15].mxu1 }
 0x238   : > { %v1183_v30 = vsel %vm1086_vm2, %v1084_v24, 0  ;;  %v1229_v31 = vsel %vm1086_vm2, %v1085_v25, 0  ;;  %2220 = vmatmul.mubr.msk.bf16.vlgmr.msra.gmra.mrb[24].mxu0 %vm1086_vm2, %v1078_v22  ;;  %2226 = vmatmul.mubr.msk.bf16.vlgmr.msra.gmra.mrb[24].mxu1 %vm1086_vm2, %v1079_v23 }
 0x239   : > { %2230 = vmatpush3.bf16.xpose.msra.mxu0 %v1183_v30  ;;  %2236 = vmatpush3.bf16.xpose.msra.mxu1 %v1229_v31 }
 0x23a   : > { %2231 = vmatprep.mubr.msk.bf16.mxu0 %vm2386_vm1, %v2385_v9  ;;  %2237 = vmatprep.mubr.msk.bf16.mxu1 %vm2386_vm1, %v2385_v9 }
 0x23b   : > { %v916_v36 = vpop.f32.mrb[16].mxu0  ;;  %v968_v37 = vpop.f32.mrb[16].mxu1  ;;  %2241 = vmatprep.subr.bf16.mxu0 %v2385_v9  ;;  %2247 = vmatprep.subr.bf16.mxu1 %v2385_v9 }
 0x23c   : > { %v917_v38 = vadd.f32 %v1987_v32, %v916_v36  ;;  %v969_v39 = vadd.f32 %v1988_v33, %v968_v37  ;;  %v2191_v40 = vpop.f32.mrb[17].mxu0  ;;  %v2199_v41 = vpop.f32.mrb[17].mxu1 }
 0x23d   : > { %v919_v42 = vpop.f32.mrb[18].mxu0  ;;  %v971_v43 = vpop.f32.mrb[18].mxu1  ;;  %v1989_v40 = vld [vmem:[%s2776_s2 + $0xa] ss:$0 sm:$0xff] }
 0x23e   : > { %v1319_v46 = vpack.c.bf16 %v917_v38, %v917_v38  ;;  %v1320_v47 = vpack.c.bf16 %v969_v39, %v969_v39  ;;  %v2192_v48 = vpop.f32.mrb[19].mxu0  ;;  %v2200_v49 = vpop.f32.mrb[19].mxu1  ;;  %v1990_v43 = vld [vmem:[%s2776_s2 + $0xb] ss:$0 sm:$0xff] }
 0x240   : > { %v1328_v50 = vsel %vm1326_vm3, %v1319_v46, 0  ;;  %v1374_v51 = vsel %vm1326_vm3, %v1320_v47, 0  ;;  %2232 = vmatmul.mubr.msk.bf16.vlgmr.msra.gmra.mrb[28].mxu0 %vm1086_vm2, %v1080_v44  ;;  %2238 = vmatmul.mubr.msk.bf16.vlgmr.msra.gmra.mrb[28].mxu1 %vm1086_vm2, %v1081_v45 }
 0x241   : > { %2242 = vmatpush3.bf16.msra.mxu0 %v1328_v50  ;;  %2248 = vmatpush3.bf16.msra.mxu1 %v1374_v51 }
 0x242   : > { %2243 = vmatprep.mubr.msk.bf16.mxu0 %vm2386_vm1, %v2385_v9  ;;  %2253 = vmatprep.subr.bf16.mxu0 %v2385_v9 }
 0x243   : > { %v2657_v52 = vpop.f32.mrb[20].mxu0  ;;  %v2659_v53 = vpop.f32.mrb[20].mxu1  ;;  %2249 = vmatprep.mubr.msk.bf16.mxu1 %vm2386_vm1, %v2385_v9  ;;  %2259 = vmatprep.subr.bf16.mxu1 %v2385_v9 }
 0x244   : > { %v2207_v54 = vpop.f32.mrb[21].mxu0  ;;  %v2215_v55 = vpop.f32.mrb[21].mxu1  ;;  %v1021_v41 = vadd.f32 %v1989_v40, %v2657_v52  ;;  %v1073_v47 = vadd.f32 %v1990_v43, %v2659_v53 }
 0x245   : > { %v1023_v56 = vpop.f32.mrb[22].mxu0  ;;  %v1075_v57 = vpop.f32.mrb[22].mxu1 }
 0x246   : > { %v2208_v58 = vpop.f32.mrb[23].mxu0  ;;  %v2216_v59 = vpop.f32.mrb[23].mxu1  ;;  %v1321_v46 = vpack.c.bf16 %v1021_v41, %v1021_v41  ;;  %v1322_v54 = vpack.c.bf16 %v1073_v47, %v1073_v47  ;;  %v2039_v47 = vld [vmem:[%s2778_s4] ss:$0 sm:$0xff] }
 0x247   : > { %v1512_v58 = vld [vmem:[%s2777_s3] sm:$0xf] }
 0x248   : > { %v1420_v51 = vsel %vm1326_vm3, %v1321_v46, 0  ;;  %v1466_v53 = vsel %vm1326_vm3, %v1322_v54, 0 }
 0x30b   : > { %v1127_v60 = vpop.f32.mrb[24].mxu0  ;;  %v1173_v61 = vpop.f32.mrb[24].mxu1 }
 0x30c   : > { %v2221_v62 = vpop.f32.mrb[25].mxu0  ;;  %v2227_v63 = vpop.f32.mrb[25].mxu1  ;;  %v1271_v1 = vsel %vm1086_vm2, %v1127_v60, -inf  ;;  %v1274_v6 = vsel %vm1086_vm2, %v1173_v61, -inf }
 0x30d   : > { %v1176_v2 = vpop.f32.mrb[26].mxu1  ;;  %1272 = vmax.xlane.f32.xlu1 %v1271_v1  ;;  %v1130_v3 = vpop.f32.mrb[26].mxu0  ;;  %v1520_v62 = vsel %vm1326_vm3, %v1512_v58, 0  ;;  %v1513_v1 = vld [vmem:[%s2777_s3 + $0x4] sm:$0xf] }
 0x30e   : > { %v2222_v4 = vpop.f32.mrb[27].mxu0  ;;  %v2228_v5 = vpop.f32.mrb[27].mxu1  ;;  %v1566_v2 = vsel %vm1326_vm3, %v1513_v1, 0  ;;  %v1514_v3 = vld [vmem:[%s2777_s3 + $0x8] sm:$0xf] }
 0x311   : > { %1275 = vmax.xlane.f32.xlu1 %v1274_v6 }
 0x313   : > { %v1219_v7 = vpop.f32.mrb[28].mxu0  ;;  %v1265_v8 = vpop.f32.mrb[28].mxu1 }
 0x314   : > { %v2233_v10 = vpop.f32.mrb[29].mxu0  ;;  %v2239_v11 = vpop.f32.mrb[29].mxu1  ;;  %v1280_v12 = vsel %vm1086_vm2, %v1265_v8, -inf  ;;  %v1277_v13 = vsel %vm1086_vm2, %v1219_v7, -inf }
 0x315   : > { %v1268_v14 = vpop.f32.mrb[30].mxu1  ;;  %1281 = vmax.xlane.f32.xlu1 %v1280_v12  ;;  %1278 = vmax.xlane.f32.xlu0 %v1277_v13  ;;  %v1222_v15 = vpop.f32.mrb[30].mxu0  ;;  %v1515_v10 = vld [vmem:[%s2777_s3 + $0xc] sm:$0xf] }
 0x316   : > { %v2234_v16 = vpop.f32.mrb[31].mxu0  ;;  %v2240_v17 = vpop.f32.mrb[31].mxu1  ;;  %v1658_v15 = vsel %vm1326_vm3, %v1515_v10, 0 }
 0x39a   : > { %v1273_v18 = vpop.xlane.xlu1 %1272 }
 0x39b   : > { %v1283_v19 = vsub.f32 %v1127_v60, %v1273_v18 }
 0x39d   : > { %v1287_v20 = vmul.f32 1.442695, %v1283_v19 }
 0x39e   : > { %v1276_v21 = vpop.xlane.xlu1 %1275 }
 0x39f   : > { %2355 = vpow2.f32 %v1287_v20  ;;  %v1284_v22 = vsub.f32 %v1173_v61, %v1276_v21 }
 0x3a1   : > { %v1289_v23 = vmul.f32 1.442695, %v1284_v22 }
 0x3a2   : > { %v1282_v24 = vpop.xlane.xlu1 %1281  ;;  %v1279_v25 = vpop.xlane.xlu0 %1278 }
 0x3a3   : > { %2357 = vpow2.f32 %v1289_v23  ;;  %v1286_v26 = vsub.f32 %v1265_v8, %v1282_v24  ;;  %v1285_v27 = vsub.f32 %v1219_v7, %v1279_v25  ;;  %v1612_v7 = vsel %vm1326_vm3, %v1514_v3, 0 }
 0x3a5   : > { %v1293_v28 = vmul.f32 1.442695, %v1286_v26  ;;  %v1291_v29 = vmul.f32 1.442695, %v1285_v27 }
 0x3a7   : > { %2359 = vpow2.f32 %v1293_v28 }
 0x3a8   : > { %2361 = vpow2.f32 %v1291_v29 }
 0x3a9   : > { %v2356_v30 = vpop.eup %2355 }
 0x3aa   : > { %v1295_v31 = vsel %vm1086_vm2, %v2356_v30, 0.0 }
 0x3ab   : > { %1296 = vadd.xlane.f32.xlu0 %v1295_v31 }
 0x3ad   : > { %v2358_v32 = vpop.eup %2357 }
 0x3ae   : > { %v1298_v33 = vsel %vm1086_vm2, %v2358_v32, 0.0 }
 0x3af   : > { %1299 = vadd.xlane.f32.xlu1 %v1298_v33 }
 0x3b1   : > { %v2360_v34 = vpop.eup %2359 }
 0x3b2   : > { %v2362_v35 = vpop.eup %2361  ;;  %v1304_v36 = vsel %vm1086_vm2, %v2360_v34, 0.0 }
 0x3b3   : > { %1305 = vadd.xlane.f32.xlu1 %v1304_v36  ;;  %v1301_v37 = vsel %vm1086_vm2, %v2362_v35, 0.0 }
 0x3b4   : > { %1302 = vadd.xlane.f32.xlu0 %v1301_v37 }
 0x438   : > { %v1297_v38 = vpop.xlane.xlu0 %1296 }
 0x439   : > { %2363 = vrcp.f32 %v1297_v38 }
 0x43c   : > { %v1300_v39 = vpop.xlane.xlu1 %1299 }
 0x43d   : > { %2365 = vrcp.f32 %v1300_v39 }
 0x440   : > { %v1306_v42 = vpop.xlane.xlu1 %1305 }
 0x441   : > { %2367 = vrcp.f32 %v1306_v42  ;;  %v1303_v44 = vpop.xlane.xlu0 %1302 }
 0x442   : > { %2369 = vrcp.f32 %v1303_v44 }
 0x443   : > { %v2364_v45 = vpop.eup %2363 }
 0x444   : > { %v1311_v48 = vmul.f32 %v2364_v45, %v2356_v30 }
 0x446   : > { %v1315_v49 = vpack.c.bf16 %v1311_v48, %v1311_v48 }
 0x447   : > { %v2366_v50 = vpop.eup %2365 }
 0x448   : > { %v1312_v55 = vmul.f32 %v2366_v50, %v2358_v32  ;;  %2244 = vmatmul.mubr.msk.bf16.vlgmr.msra.gmra.mrb[32].mxu0 %vm1086_vm2, %v1315_v49 }
 0x449   : > { %2254 = vmatpush3.bf16.msra.mxu0 %v1420_v51  ;;  %2255 = vmatprep.mubr.msk.bf16.mxu0 %vm2386_vm1, %v2385_v9 }
 0x44a   : > { %v1316_v52 = vpack.c.bf16 %v1312_v55, %v1312_v55  ;;  %2265 = vmatprep.subr.bf16.mxu0 %v2385_v9 }
 0x44b   : > { %v2368_v56 = vpop.eup %2367 }
 0x44c   : > { %v2370_v57 = vpop.eup %2369  ;;  %2250 = vmatmul.mubr.msk.bf16.vlgmr.msra.gmra.mrb[32].mxu1 %vm1086_vm2, %v1316_v52  ;;  %v1314_v60 = vmul.f32 %v2368_v56, %v2360_v34 }
 0x44d   : > { %v1313_v59 = vmul.f32 %v2370_v57, %v2362_v35  ;;  %2260 = vmatpush3.bf16.msra.mxu1 %v1466_v53  ;;  %2261 = vmatprep.mubr.msk.bf16.mxu1 %vm2386_vm1, %v2385_v9 }
 0x44e   : > { %2271 = vmatprep.subr.bf16.mxu1 %v2385_v9  ;;  %v1318_v63 = vpack.c.bf16 %v1314_v60, %v1314_v60  ;;  %v2347_v60 = vld [vmem:[%s2779_s5] sm:$0xff]  }
 0x44f   : > { %v1317_v61 = vpack.c.bf16 %v1313_v59, %v1313_v59 }
 0x451   : > { %2256 = vmatmul.mubr.msk.bf16.vlgmr.msra.gmra.mrb[36].mxu0 %vm1086_vm2, %v1317_v61 }
 0x452   : > { %2266 = vmatpush3.bf16.msra.mxu0 %v1520_v62  ;;  %2267 = vmatprep.mubr.msk.bf16.mxu0 %vm2386_vm1, %v2385_v9 }
 0x453   : > { %2277 = vmatprep.subr.bf16.mxu0 %v2385_v9 }
 0x454   : > { %2262 = vmatmul.mubr.msk.bf16.vlgmr.msra.gmra.mrb[36].mxu1 %vm1086_vm2, %v1318_v63 }
 0x455   : > { %2273 = vmatprep.mubr.msk.bf16.mxu1 %vm2386_vm1, %v2385_v9  ;;  %2272 = vmatpush3.bf16.msra.mxu1 %v1566_v2 }
 0x456   : > { %2283 = vmatprep.subr.bf16.mxu1 %v2385_v9 }
 0x51b   : > { %v1364_v4 = vpop.f32.mrb[32].mxu0 }
 0x51c   : > { %v1508_v5 = vpack.c.bf16 %v1364_v4, %v1364_v4  ;;  %v2245_v6 = vpop.f32.mrb[33].mxu0  ;;  %v2349_v4 = vld [vmem:[%s2780_s6] sm:$0xff]  }
 0x51d   : > { %v1367_v8 = vpop.f32.mrb[34].mxu0  ;;  %v2351_v6 = vld [vmem:[%s2781_s7] sm:$0xff]  }
 0x51e   : > { %v2246_v11 = vpop.f32.mrb[35].mxu0  ;;  %2268 = vmatmul.mubr.msk.bf16.vlgmr.msra.gmra.mrb[40].mxu0 %vm1086_vm2, %v1508_v5  ;;  %v2350_v5 = vld [vmem:[%s2780_s6 + $0x8] sm:$0xff]  }
 0x51f   : > { %v1410_v12 = vpop.f32.mrb[32].mxu1  ;;  %2278 = vmatpush3.bf16.msra.mxu0 %v1612_v7  ;;  %2279 = vmatprep.mubr.msk.bf16.mxu0 %vm2386_vm1, %v2385_v9 }
 0x520   : > { %v1509_v13 = vpack.c.bf16 %v1410_v12, %v1410_v12  ;;  %v2251_v14 = vpop.f32.mrb[33].mxu1  ;;  %2289 = vmatprep.subr.bf16.mxu0 %v2385_v9 }
 0x521   : > { %v1413_v16 = vpop.f32.mrb[34].mxu1 }
 0x522   : > { %v2252_v17 = vpop.f32.mrb[35].mxu1  ;;  %2274 = vmatmul.mubr.msk.bf16.vlgmr.msra.gmra.mrb[40].mxu1 %vm1086_vm2, %v1509_v13 }
 0x523   : > { %2284 = vmatpush3.bf16.msra.mxu1 %v1658_v15  ;;  %2285 = vmatprep.mubr.msk.bf16.mxu1 %vm2386_vm1, %v2385_v9 }
 0x524   : > { %v1456_v18 = vpop.f32.mrb[36].mxu0  ;;  %2297 = vmatprep.subr.bf16.mxu1 %v2385_v9 }
 0x525   : > { %v1510_v19 = vpack.c.bf16 %v1456_v18, %v1456_v18  ;;  %v2257_v20 = vpop.f32.mrb[37].mxu0  ;;  %v2352_v18 = vld [vmem:[%s2781_s7 + $0x8] sm:$0xff]  }
 0x526   : > { %v1459_v21 = vpop.f32.mrb[38].mxu0 }
 0x527   : > { %v2258_v22 = vpop.f32.mrb[39].mxu0  ;;  %2280 = vmatmul.mubr.msk.bf16.vlgmr.msra.gmra.mrb[44].mxu0 %vm1086_vm2, %v1510_v19  ;;  %v1502_v23 = vpop.f32.mrb[36].mxu1 }
 0x528   : > { %v1511_v24 = vpack.c.bf16 %v1502_v23, %v1502_v23  ;;  %v2263_v25 = vpop.f32.mrb[37].mxu1  ;;  %2293 = vmatprep.mubr.msk.bf16.mxu0 %vm2386_vm1, %v2385_v9  ;;  %2290 = vmatpush3.bf16.msra.mxu0 %v2347_v60 }
 0x529   : > { %v1505_v26 = vpop.f32.mrb[38].mxu1  ;;  %2291 = vmatprep.subr.bf16.mxu0 %v2385_v9 }
 0x52a   : > { %v2264_v27 = vpop.f32.mrb[39].mxu1  ;;  %2286 = vmatmul.mubr.msk.bf16.vlgmr.msra.gmra.mrb[44].mxu1 %vm1086_vm2, %v1511_v24 }
 0x52b   : > { %2301 = vmatprep.mubr.msk.bf16.mxu1 %vm2386_vm1, %v2385_v9  ;;  %2298 = vmatpush3.bf16.msra.mxu1 %v2349_v4 }
 0x52c   : > { %2299 = vmatprep.subr.bf16.mxu1 %v2385_v9 }
 0x52f   : > { %2300 = vmatpush3.bf16.msra.mxu1 %v2350_v5 }
 0x5f1   : > { %v1556_v28 = vpop.f32.mrb[40].mxu0 }
 0x5f2   : > { %v2269_v29 = vpop.f32.mrb[41].mxu0  ;;  %v1700_v33 = vsel %vm303_vm0, %v1556_v28, 0.0 }
 0x5f3   : > { %v1559_v30 = vpop.f32.mrb[42].mxu0 }
 0x5f4   : > { %v2270_v31 = vpop.f32.mrb[43].mxu0 }
 0x5f5   : > { %v1602_v32 = vpop.f32.mrb[40].mxu1 }
 0x5f6   : > { %v1701_v34 = vsel %vm303_vm0, %v1602_v32, 0.0  ;;  %v2275_v35 = vpop.f32.mrb[41].mxu1 }
 0x5f7   : > { %v1702_v36 = vadd.f32 %v1701_v34, %v1700_v33  ;;  %v1605_v37 = vpop.f32.mrb[42].mxu1 }
 0x5f8   : > { %v2276_v38 = vpop.f32.mrb[43].mxu1 }
 0x5fa   : > { %v1648_v39 = vpop.f32.mrb[44].mxu0 }
 0x5fb   : > { %v1703_v40 = vsel %vm303_vm0, %v1648_v39, 0.0  ;;  %v2281_v41 = vpop.f32.mrb[45].mxu0 }
 0x5fc   : > { %v1704_v42 = vadd.f32 %v1703_v40, %v1702_v36  ;;  %v1651_v43 = vpop.f32.mrb[46].mxu0 }
 0x5fd   : > { %v2282_v44 = vpop.f32.mrb[47].mxu0  ;;  %v1694_v45 = vpop.f32.mrb[44].mxu1 }
 0x5fe   : > { %v1705_v46 = vsel %vm303_vm0, %v1694_v45, 0.0  ;;  %v2287_v48 = vpop.f32.mrb[45].mxu1 }
 0x5ff   : > { %v1706_v49 = vadd.f32 %v1705_v46, %v1704_v42  ;;  %v1697_v50 = vpop.f32.mrb[46].mxu1 }
 0x600   : > { %v2288_v51 = vpop.f32.mrb[47].mxu1 }
 0x601   : > { %v1714_v54 = vadd.f32 %v2039_v47, %v1706_v49 }
 0x603   : > { %v1715_v55 = vadd.f32 %v1714_v54, %v2448_v0  ;;  %v2348_v0 = vld [vmem:[%s2779_s5 + $0x8] sm:$0xff]  }
 0x604   : > { %2292 = vmatpush3.bf16.msra.mxu0 %v2348_v0 }
 0x605   : > { %v1716_v52 = vsel %vm303_vm0, %v1715_v55, 0.0  ;;  %2305 = vmatprep.subr.bf16.mxu0 %v2385_v9 }
 0x606   : > { %1717 = vadd.xlane.f32.xlu0 %v1716_v52 }
 0x693   : > { %v1718_v56 = vpop.xlane.xlu0 %1717 }
 0x694   : > { %v1719_v57 = vmul.f32 0.03125, %v1718_v56 }
 0x696   : > { %v1720_v53 = vsub.f32 %v1715_v55, %v1719_v57 }
 0x698   : > { %v1721_v58 = vmul.f32 %v1720_v53, %v1720_v53 }
 0x69a   : > { %v1722_v59 = vsel %vm303_vm0, %v1721_v58, 0.0 }
 0x69b   : > { %1723 = vadd.xlane.f32.xlu1 %v1722_v59 }
 0x728   : > { %v1724_v61 = vpop.xlane.xlu1 %1723 }
 0x729   : > { %v1725_v62 = vmul.f32 0.03125, %v1724_v61 }
 0x72b   : > { %v1726_v63 = vadd.f32 1e-05, %v1725_v62 }
 0x72d   : > { %2371 = vrsqrt.f32 %v1726_v63 }
 0x737   : > { %v2372_v1 = vpop.eup %2371 }
 0x738   : > { %v1728_v2 = vmul.f32 %v2372_v1, %v1720_v53 }
 0x73a   : > { %v1729_v3 = vpack.c.bf16 %v1728_v2, %v1728_v2 }
 0x73c   : > { %2294 = vmatmul.mubr.msk.bf16.vlgmr.msra.gmra.mrb[48].mxu0 %vm303_vm0, %v1729_v3 }
 0x73d   : > { %2309 = vmatprep.mubr.msk.bf16.mxu0 %vm2386_vm1, %v2385_v9  ;;  %2306 = vmatpush3.bf16.msra.mxu0 %v2351_v6 }
 0x73e   : > { %2307 = vmatprep.subr.bf16.mxu0 %v2385_v9 }
 0x741   : > { %2308 = vmatpush3.bf16.msra.mxu0 %v2352_v18 }
 0x80f   : > { %v1783_v7 = vpop.f32.mrb[48].mxu0 }
 0x810   : > { %v2043_v8 = vmul.f32 -1.442695, %v1783_v7  ;;  %v2295_v10 = vpop.f32.mrb[49].mxu0 }
 0x811   : > { %v1786_v11 = vpop.f32.mrb[50].mxu0 }
 0x812   : > { %2373 = vpow2.f32 %v2043_v8  ;;  %v2296_v12 = vpop.f32.mrb[51].mxu0 }
 0x81c   : > { %v2374_v13 = vpop.eup %2373 }
 0x81d   : > { %v1792_v14 = vadd.f32 1.0, %v2374_v13 }
 0x81f   : > { %2375 = vrcp.f32 %v1792_v14 }
 0x829   : > { %v2376_v15 = vpop.eup %2375 }
 0x82a   : > { %v1795_v16 = vmul.f32 %v2376_v15, %v1783_v7 }
 0x82c   : > { %v1796_v17 = vpack.c.bf16 %v1795_v16, %v1795_v16 }
 0x82e   : > { %2302 = vmatmul.mubr.msk.bf16.vlgmr.msra.gmra.mrb[48].mxu1 %vm303_vm0, %v1796_v17 }
 0x901   : > { %v1850_v9 = vpop.f32.mrb[48].mxu1 }
 0x902   : > { %v1856_v19 = vmul.f32 %v1850_v9, %v1795_v16  ;;  %v2303_v20 = vpop.f32.mrb[49].mxu1 }
 0x903   : > { %v1853_v21 = vpop.f32.mrb[50].mxu1 }
 0x904   : > { %v1857_v22 = vpack.c.bf16 %v1856_v19, %v1856_v19  ;;  %v2304_v23 = vpop.f32.mrb[51].mxu1 }
 0x906   : > { %2310 = vmatmul.mubr.msk.bf16.vlgmr.msra.gmra.mrb[52].mxu0 %vm303_vm0, %v1857_v22 }
 0x9d9   : > { %v1911_v24 = vpop.f32.mrb[52].mxu0 }
 0x9da   : > { %v1917_v25 = vadd.f32 %v1911_v24, %v1715_v55  ;;  %v2311_v26 = vpop.f32.mrb[53].mxu0 }
 0x9db   : > { %v1914_v27 = vpop.f32.mrb[54].mxu0 }
 0x9dc   : > { %1918 = vst.msk [vmem:[%s300_s12] sm:$0xff] %vm303_vm0, %v1917_v25  ;;  %v2312_v28 = vpop.f32.mrb[55].mxu0 }
 0x9dd PF: > { %s18_s27 = sadd.s32 1, %s2383_s27  }
 0x9de   : > { %p15_p4 = scmp.ge.s32.totalorder %s18_s27, 4  }
 0x9e0   :  { %17 = sbr.rel (!%p15_p4) target bundleno = 1 (0x1), region = 82 }

</bundles_post_ra>
